<compile_context>
chip_gen: v7x
topology: tpu7x:2x2x1
jax: 0.10.0
libtpu: 0.0.40
codegen_flags: <defaults>
</compile_context>

<pallas_src>
import math

import jax
import jax.numpy as jnp
from jax.experimental import pallas as pl
from jax.experimental.pallas import tpu as pltpu


def _lstm_kernel(x_ref, w_ih_ref, w_hh_ref, b_ref, w_out_ref, b_out_ref,
                 out_ref):
    """Whole-sequence LSTM + per-step (lane-padded) output projection.

    Refs:
      x_ref:     (B, S, I)   batch-first input, whole sequence
      w_ih_ref:  (I, 4H)     input->gate weights (pre-transposed)
      w_hh_ref:  (H, 4H)     hidden->gate weights (pre-transposed)
      b_ref:     (1, 4H)     combined bias (b_ih + b_hh)
      w_out_ref: (H, OP)     output Linear weight, zero-padded to OP=128 lanes
      b_out_ref: (1, OP)     output Linear bias, zero-padded to OP lanes
      out_ref:   (B, S, OP)  lane-dense output (padding sliced off by wrapper)
    """
    B, S, I = x_ref.shape
    H = w_hh_ref.shape[0]

    # ---- hoisted input projection: one matmul for every timestep ----------
    x2d = x_ref[...].reshape(B * S, I)                       # row = b*S + t
    xg = (jnp.dot(x2d, w_ih_ref[...], preferred_element_type=jnp.float32)
          + b_ref[...])                                      # (B*S, 4H)
    xg = xg.reshape(B, S, 4 * H)                             # free reshape

    # ---- load weights once (off the serial chain) --------------------------
    w_hh = w_hh_ref[...]                                     # (H, 4H)
    w_out = w_out_ref[...]                                   # (H, OP)
    b_out = b_out_ref[...]                                   # (1, OP)

    # ---- sequential recurrence (fully unrolled, static indices) -----------
    h = jnp.zeros((B, H), jnp.float32)
    c = jnp.zeros((B, H), jnp.float32)
    for t in range(S):
        gates = (jnp.dot(h, w_hh, preferred_element_type=jnp.float32)
                 + xg[:, t, :])                              # (B, 4H)
        # Whole-vreg activations: 2 EUP pushes on the full 4H lanes,
        # then static lane slices.  PyTorch gate order: i, f, g, o.
        sig = jax.nn.sigmoid(gates)                          # (B, 4H)
        th = jnp.tanh(gates)                                 # (B, 4H)
        i_g = sig[:, 0 * H:1 * H]
        f_g = sig[:, 1 * H:2 * H]
        g_g = th[:, 2 * H:3 * H]
        o_g = sig[:, 3 * H:4 * H]
        c = f_g * c + i_g * g_g
        h = o_g * jnp.tanh(c)
        # Per-step output projection + lane-dense (128-wide) store; this only
        # consumes h_t and nothing on the serial chain depends on it.
        out_t = (jnp.dot(h, w_out, preferred_element_type=jnp.float32)
                 + b_out)                                    # (B, OP)
        out_ref[:, t, :] = out_t.astype(out_ref.dtype)


def lstm_v1_forward(x, params):
    """x: (B, S, I) float32.  Returns (B, S, O) — same as LSTMv1.forward."""
    B, S, I = x.shape
    w_ih_t = params["w_ih_t"]    # (I, 4H)
    w_hh_t = params["w_hh_t"]    # (H, 4H)
    bias = params["bias"]        # (1, 4H)
    w_out_t = params["w_out_t"]  # (H, O)
    b_out = params["b_out"]      # (1, O)
    H = w_hh_t.shape[0]
    O = w_out_t.shape[1]

    # Zero-pad the output projection to a full 128-lane tile so every output
    # store is lane-dense (unmasked vst); the padding columns compute to 0
    # and are sliced off below.
    OP = 128 * pl.cdiv(O, 128)
    w_out_p = jnp.zeros((H, OP), jnp.float32).at[:, :O].set(w_out_t)
    b_out_p = jnp.zeros((1, OP), jnp.float32).at[:, :O].set(b_out)

    out_pad = pl.pallas_call(
        _lstm_kernel,
        out_shape=jax.ShapeDtypeStruct((B, S, OP), jnp.float32),
        grid=(1,),                                           # single invocation
        in_specs=[
            pl.BlockSpec((B, S, I), lambda i: (0, 0, 0)),
            pl.BlockSpec((I, 4 * H), lambda i: (0, 0)),
            pl.BlockSpec((H, 4 * H), lambda i: (0, 0)),
            pl.BlockSpec((1, 4 * H), lambda i: (0, 0)),
            pl.BlockSpec((H, OP), lambda i: (0, 0)),
            pl.BlockSpec((1, OP), lambda i: (0, 0)),
        ],
        out_specs=pl.BlockSpec((B, S, OP), lambda i: (0, 0, 0)),
        compiler_params=pltpu.CompilerParams(
            dimension_semantics=("arbitrary",),
        ),
    )(x, w_ih_t, w_hh_t, bias, w_out_p, b_out_p)

    # NOTE: this slice materializes one small XLA copy; callers that can
    # consume the padded (B, S, 128) slab directly should do so.
    return out_pad[:, :, :O]                                 # (B, S, O)


def init_params(key, input_size, hidden_size, output_size):
    """Deterministic synthetic init matching PyTorch parameter shapes.

    nn.LSTM layer 0:  weight_ih (4H, I), weight_hh (4H, H), bias_ih (4H,), bias_hh (4H,)
    nn.Linear:        weight (O, H), bias (O,)
    """
    k = jax.random.split(key, 6)
    bound_l = 1.0 / math.sqrt(hidden_size)
    w_ih = jax.random.uniform(k[0], (4 * hidden_size, input_size), jnp.float32,
                              -bound_l, bound_l)
    w_hh = jax.random.uniform(k[1], (4 * hidden_size, hidden_size), jnp.float32,
                              -bound_l, bound_l)
    b_ih = jax.random.uniform(k[2], (4 * hidden_size,), jnp.float32, -bound_l, bound_l)
    b_hh = jax.random.uniform(k[3], (4 * hidden_size,), jnp.float32, -bound_l, bound_l)
    w_out = jax.random.uniform(k[4], (output_size, hidden_size), jnp.float32,
                               -bound_l, bound_l)
    b_out = jax.random.uniform(k[5], (output_size,), jnp.float32, -bound_l, bound_l)
    return {
        "w_ih_t": w_ih.T,                             # (I, 4H)
        "w_hh_t": w_hh.T,                             # (H, 4H)
        "bias": (b_ih + b_hh).reshape(1, -1),         # (1, 4H)
        "w_out_t": w_out.T,                           # (H, O)
        "b_out": b_out.reshape(1, -1),                # (1, O)
    }


def _reference_forward(x, params):
    """Pure-JAX reference (lax.scan LSTM) for correctness checking."""
    B, S, I = x.shape
    H = params["w_hh_t"].shape[0]

    def step(carry, x_t):
        h, c = carry
        gates = x_t @ params["w_ih_t"] + h @ params["w_hh_t"] + params["bias"][0]
        i_g = jax.nn.sigmoid(gates[:, 0 * H:1 * H])
        f_g = jax.nn.sigmoid(gates[:, 1 * H:2 * H])
        g_g = jnp.tanh(gates[:, 2 * H:3 * H])
        o_g = jax.nn.sigmoid(gates[:, 3 * H:4 * H])
        c_new = f_g * c + i_g * g_g
        h_new = o_g * jnp.tanh(c_new)
        return (h_new, c_new), h_new

    h0 = jnp.zeros((B, H), jnp.float32)
    c0 = jnp.zeros((B, H), jnp.float32)
    _, hs = jax.lax.scan(step, (h0, c0), jnp.transpose(x, (1, 0, 2)))
    hs = jnp.transpose(hs, (1, 0, 2))                    # (B, S, H)
    return hs @ params["w_out_t"] + params["b_out"][0]   # (B, S, O)


if __name__ == "__main__":
    # NOTE: module is "OneLayerLSTM" -> num_layers = 1.
    batch, seq, input_size, hidden_size, output_size = 2, 8, 16, 32, 8

    key = jax.random.PRNGKey(0)
    k_x, k_p = jax.random.split(key)
    x = jax.random.normal(k_x, (batch, seq, input_size), jnp.float32)
    params = init_params(k_p, input_size, hidden_size, output_size)

    out = jax.block_until_ready(lstm_v1_forward(x, params))
    assert out.shape == (batch, seq, output_size)

    ref = jax.block_until_ready(_reference_forward(x, params))
    assert jnp.allclose(out, ref, atol=1e-5, rtol=1e-5), "mismatch vs JAX reference"

    print("KERNEL_OK")
</pallas_src>

<mosaic_0001>
module attributes {stable_mosaic.version = 11 : i64} {
  func.func @_lstm_kernel(%arg0: i32, %arg1: memref<2x8x16xf32, #tpu.memory_space<vmem>>, %arg2: memref<16x128xf32, #tpu.memory_space<vmem>>, %arg3: memref<32x128xf32, #tpu.memory_space<vmem>>, %arg4: memref<1x128xf32, #tpu.memory_space<vmem>>, %arg5: memref<32x128xf32, #tpu.memory_space<vmem>>, %arg6: memref<1x128xf32, #tpu.memory_space<vmem>>, %arg7: memref<2x8x128xf32, #tpu.memory_space<vmem>>) attributes {dimension_semantics = [#tpu.dimension_semantics<arbitrary>], iteration_bounds = array<i64: 1>, scalar_prefetch = 0 : i64, scratch_operands = 0 : i64, tpu.core_type = #tpu.core_type<tc>, window_params = [{pipeline_mode = #tpu.pipeline_mode<synchronous>, transform_indices = @transform_0, window_bounds = array<i64: 2, 8, 16>}, {pipeline_mode = #tpu.pipeline_mode<synchronous>, transform_indices = @transform_1, window_bounds = array<i64: 16, 128>}, {pipeline_mode = #tpu.pipeline_mode<synchronous>, transform_indices = @transform_2, window_bounds = array<i64: 32, 128>}, {pipeline_mode = #tpu.pipeline_mode<synchronous>, transform_indices = @transform_3, window_bounds = array<i64: 1, 128>}, {pipeline_mode = #tpu.pipeline_mode<synchronous>, transform_indices = @transform_4, window_bounds = array<i64: 32, 128>}, {pipeline_mode = #tpu.pipeline_mode<synchronous>, transform_indices = @transform_5, window_bounds = array<i64: 1, 128>}, {pipeline_mode = #tpu.pipeline_mode<synchronous>, transform_indices = @transform_6, window_bounds = array<i64: 2, 8, 128>}]} {
    %c0 = arith.constant 0 : index
    %c0_0 = arith.constant 0 : index
    %c0_1 = arith.constant 0 : index
    %0 = vector.load %arg1[%c0, %c0_0, %c0_1] : memref<2x8x16xf32, #tpu.memory_space<vmem>>, vector<2x8x16xf32>
    %1 = vector.shape_cast %0 : vector<2x8x16xf32> to vector<16x16xf32>
    %c0_2 = arith.constant 0 : index
    %c0_3 = arith.constant 0 : index
    %2 = vector.load %arg2[%c0_2, %c0_3] : memref<16x128xf32, #tpu.memory_space<vmem>>, vector<16x128xf32>
    %cst = arith.constant dense<0.000000e+00> : vector<16x128xf32>
    %3 = tpu.matmul %1, %2, %cst {dimension_numbers = #tpu.dot_dimension_numbers<[1], [0], [0], [1], [0, 0, 1, 1], [], []>} : vector<16x16xf32>, vector<16x128xf32>, vector<16x128xf32> -> vector<16x128xf32>
    %c0_4 = arith.constant 0 : index
    %c0_5 = arith.constant 0 : index
    %4 = vector.load %arg4[%c0_4, %c0_5] : memref<1x128xf32, #tpu.memory_space<vmem>>, vector<1x128xf32>
    %5 = vector.broadcast %4 : vector<1x128xf32> to vector<16x128xf32>
    %6 = arith.addf %3, %5 : vector<16x128xf32>
    %7 = vector.shape_cast %6 : vector<16x128xf32> to vector<2x8x128xf32>
    %c0_6 = arith.constant 0 : index
    %c0_7 = arith.constant 0 : index
    %8 = vector.load %arg3[%c0_6, %c0_7] : memref<32x128xf32, #tpu.memory_space<vmem>>, vector<32x128xf32>
    %c0_8 = arith.constant 0 : index
    %c0_9 = arith.constant 0 : index
    %9 = vector.load %arg5[%c0_8, %c0_9] : memref<32x128xf32, #tpu.memory_space<vmem>>, vector<32x128xf32>
    %c0_10 = arith.constant 0 : index
    %c0_11 = arith.constant 0 : index
    %10 = vector.load %arg6[%c0_10, %c0_11] : memref<1x128xf32, #tpu.memory_space<vmem>>, vector<1x128xf32>
    %cst_12 = arith.constant 0.000000e+00 : f32
    %11 = vector.broadcast %cst_12 : f32 to vector<2x32xf32>
    %cst_13 = arith.constant 0.000000e+00 : f32
    %12 = vector.broadcast %cst_13 : f32 to vector<2x32xf32>
    %cst_14 = arith.constant dense<0.000000e+00> : vector<2x128xf32>
    %13 = tpu.matmul %11, %8, %cst_14 {dimension_numbers = #tpu.dot_dimension_numbers<[1], [0], [0], [1], [0, 0, 1, 1], [], []>} : vector<2x32xf32>, vector<32x128xf32>, vector<2x128xf32> -> vector<2x128xf32>
    %14 = vector.extract_strided_slice %7 {offsets = [0, 0, 0], sizes = [2, 1, 128], strides = [1, 1, 1]} : vector<2x8x128xf32> to vector<2x1x128xf32>
    %15 = vector.shape_cast %14 : vector<2x1x128xf32> to vector<2x128xf32>
    %16 = arith.addf %13, %15 : vector<2x128xf32>
    %17 = arith.negf %16 : vector<2x128xf32>
    %18 = math.exp %17 : vector<2x128xf32>
    %cst_15 = arith.constant 1.000000e+00 : f32
    %19 = vector.broadcast %cst_15 : f32 to vector<2x128xf32>
    %20 = arith.addf %19, %18 : vector<2x128xf32>
    %21 = arith.divf %19, %20 : vector<2x128xf32>
    %22 = math.tanh %16 : vector<2x128xf32>
    %23 = vector.extract_strided_slice %21 {offsets = [0, 0], sizes = [2, 32], strides = [1, 1]} : vector<2x128xf32> to vector<2x32xf32>
    %24 = vector.extract_strided_slice %21 {offsets = [0, 32], sizes = [2, 32], strides = [1, 1]} : vector<2x128xf32> to vector<2x32xf32>
    %25 = vector.extract_strided_slice %22 {offsets = [0, 64], sizes = [2, 32], strides = [1, 1]} : vector<2x128xf32> to vector<2x32xf32>
    %26 = vector.extract_strided_slice %21 {offsets = [0, 96], sizes = [2, 32], strides = [1, 1]} : vector<2x128xf32> to vector<2x32xf32>
    %27 = arith.mulf %24, %12 : vector<2x32xf32>
    %28 = arith.mulf %23, %25 : vector<2x32xf32>
    %29 = arith.addf %27, %28 : vector<2x32xf32>
    %30 = math.tanh %29 : vector<2x32xf32>
    %31 = arith.mulf %26, %30 : vector<2x32xf32>
    %cst_16 = arith.constant dense<0.000000e+00> : vector<2x128xf32>
    %32 = tpu.matmul %31, %9, %cst_16 {dimension_numbers = #tpu.dot_dimension_numbers<[1], [0], [0], [1], [0, 0, 1, 1], [], []>} : vector<2x32xf32>, vector<32x128xf32>, vector<2x128xf32> -> vector<2x128xf32>
    %33 = vector.broadcast %10 : vector<1x128xf32> to vector<2x128xf32>
    %34 = arith.addf %32, %33 : vector<2x128xf32>
    %c0_17 = arith.constant 0 : index
    %c0_18 = arith.constant 0 : index
    %c0_19 = arith.constant 0 : index
    %35 = vector.load %arg7[%c0_17, %c0_18, %c0_19] : memref<2x8x128xf32, #tpu.memory_space<vmem>>, vector<2x1x128xf32>
    %36 = vector.shape_cast %35 : vector<2x1x128xf32> to vector<2x128xf32>
    %37 = vector.shape_cast %34 : vector<2x128xf32> to vector<2x1x128xf32>
    tpu.vector_store %arg7[%c0_17, %c0_18, %c0_19], %37 {strides = array<i32>} : memref<2x8x128xf32, #tpu.memory_space<vmem>>, vector<2x1x128xf32>,
    %cst_20 = arith.constant dense<0.000000e+00> : vector<2x128xf32>
    %38 = tpu.matmul %31, %8, %cst_20 {dimension_numbers = #tpu.dot_dimension_numbers<[1], [0], [0], [1], [0, 0, 1, 1], [], []>} : vector<2x32xf32>, vector<32x128xf32>, vector<2x128xf32> -> vector<2x128xf32>
    %39 = vector.extract_strided_slice %7 {offsets = [0, 1, 0], sizes = [2, 1, 128], strides = [1, 1, 1]} : vector<2x8x128xf32> to vector<2x1x128xf32>
    %40 = vector.shape_cast %39 : vector<2x1x128xf32> to vector<2x128xf32>
    %41 = arith.addf %38, %40 : vector<2x128xf32>
    %42 = arith.negf %41 : vector<2x128xf32>
    %43 = math.exp %42 : vector<2x128xf32>
    %cst_21 = arith.constant 1.000000e+00 : f32
    %44 = vector.broadcast %cst_21 : f32 to vector<2x128xf32>
    %45 = arith.addf %44, %43 : vector<2x128xf32>
    %46 = arith.divf %44, %45 : vector<2x128xf32>
    %47 = math.tanh %41 : vector<2x128xf32>
    %48 = vector.extract_strided_slice %46 {offsets = [0, 0], sizes = [2, 32], strides = [1, 1]} : vector<2x128xf32> to vector<2x32xf32>
    %49 = vector.extract_strided_slice %46 {offsets = [0, 32], sizes = [2, 32], strides = [1, 1]} : vector<2x128xf32> to vector<2x32xf32>
    %50 = vector.extract_strided_slice %47 {offsets = [0, 64], sizes = [2, 32], strides = [1, 1]} : vector<2x128xf32> to vector<2x32xf32>
    %51 = vector.extract_strided_slice %46 {offsets = [0, 96], sizes = [2, 32], strides = [1, 1]} : vector<2x128xf32> to vector<2x32xf32>
    %52 = arith.mulf %49, %29 : vector<2x32xf32>
    %53 = arith.mulf %48, %50 : vector<2x32xf32>
    %54 = arith.addf %52, %53 : vector<2x32xf32>
    %55 = math.tanh %54 : vector<2x32xf32>
    %56 = arith.mulf %51, %55 : vector<2x32xf32>
    %cst_22 = arith.constant dense<0.000000e+00> : vector<2x128xf32>
    %57 = tpu.matmul %56, %9, %cst_22 {dimension_numbers = #tpu.dot_dimension_numbers<[1], [0], [0], [1], [0, 0, 1, 1], [], []>} : vector<2x32xf32>, vector<32x128xf32>, vector<2x128xf32> -> vector<2x128xf32>
    %58 = vector.broadcast %10 : vector<1x128xf32> to vector<2x128xf32>
    %59 = arith.addf %57, %58 : vector<2x128xf32>
    %c0_23 = arith.constant 0 : index
    %c1 = arith.constant 1 : index
    %c0_24 = arith.constant 0 : index
    %60 = vector.load %arg7[%c0_23, %c1, %c0_24] : memref<2x8x128xf32, #tpu.memory_space<vmem>>, vector<2x1x128xf32>
    %61 = vector.shape_cast %60 : vector<2x1x128xf32> to vector<2x128xf32>
    %62 = vector.shape_cast %59 : vector<2x128xf32> to vector<2x1x128xf32>
    tpu.vector_store %arg7[%c0_23, %c1, %c0_24], %62 {strides = array<i32>} : memref<2x8x128xf32, #tpu.memory_space<vmem>>, vector<2x1x128xf32>,
    %cst_25 = arith.constant dense<0.000000e+00> : vector<2x128xf32>
    %63 = tpu.matmul %56, %8, %cst_25 {dimension_numbers = #tpu.dot_dimension_numbers<[1], [0], [0], [1], [0, 0, 1, 1], [], []>} : vector<2x32xf32>, vector<32x128xf32>, vector<2x128xf32> -> vector<2x128xf32>
    %64 = vector.extract_strided_slice %7 {offsets = [0, 2, 0], sizes = [2, 1, 128], strides = [1, 1, 1]} : vector<2x8x128xf32> to vector<2x1x128xf32>
    %65 = vector.shape_cast %64 : vector<2x1x128xf32> to vector<2x128xf32>
    %66 = arith.addf %63, %65 : vector<2x128xf32>
    %67 = arith.negf %66 : vector<2x128xf32>
    %68 = math.exp %67 : vector<2x128xf32>
    %cst_26 = arith.constant 1.000000e+00 : f32
    %69 = vector.broadcast %cst_26 : f32 to vector<2x128xf32>
    %70 = arith.addf %69, %68 : vector<2x128xf32>
    %71 = arith.divf %69, %70 : vector<2x128xf32>
    %72 = math.tanh %66 : vector<2x128xf32>
    %73 = vector.extract_strided_slice %71 {offsets = [0, 0], sizes = [2, 32], strides = [1, 1]} : vector<2x128xf32> to vector<2x32xf32>
    %74 = vector.extract_strided_slice %71 {offsets = [0, 32], sizes = [2, 32], strides = [1, 1]} : vector<2x128xf32> to vector<2x32xf32>
    %75 = vector.extract_strided_slice %72 {offsets = [0, 64], sizes = [2, 32], strides = [1, 1]} : vector<2x128xf32> to vector<2x32xf32>
    %76 = vector.extract_strided_slice %71 {offsets = [0, 96], sizes = [2, 32], strides = [1, 1]} : vector<2x128xf32> to vector<2x32xf32>
    %77 = arith.mulf %74, %54 : vector<2x32xf32>
    %78 = arith.mulf %73, %75 : vector<2x32xf32>
    %79 = arith.addf %77, %78 : vector<2x32xf32>
    %80 = math.tanh %79 : vector<2x32xf32>
    %81 = arith.mulf %76, %80 : vector<2x32xf32>
    %cst_27 = arith.constant dense<0.000000e+00> : vector<2x128xf32>
    %82 = tpu.matmul %81, %9, %cst_27 {dimension_numbers = #tpu.dot_dimension_numbers<[1], [0], [0], [1], [0, 0, 1, 1], [], []>} : vector<2x32xf32>, vector<32x128xf32>, vector<2x128xf32> -> vector<2x128xf32>
    %83 = vector.broadcast %10 : vector<1x128xf32> to vector<2x128xf32>
    %84 = arith.addf %82, %83 : vector<2x128xf32>
    %c0_28 = arith.constant 0 : index
    %c2 = arith.constant 2 : index
    %c0_29 = arith.constant 0 : index
    %85 = vector.load %arg7[%c0_28, %c2, %c0_29] : memref<2x8x128xf32, #tpu.memory_space<vmem>>, vector<2x1x128xf32>
    %86 = vector.shape_cast %85 : vector<2x1x128xf32> to vector<2x128xf32>
    %87 = vector.shape_cast %84 : vector<2x128xf32> to vector<2x1x128xf32>
    tpu.vector_store %arg7[%c0_28, %c2, %c0_29], %87 {strides = array<i32>} : memref<2x8x128xf32, #tpu.memory_space<vmem>>, vector<2x1x128xf32>,
    %cst_30 = arith.constant dense<0.000000e+00> : vector<2x128xf32>
    %88 = tpu.matmul %81, %8, %cst_30 {dimension_numbers = #tpu.dot_dimension_numbers<[1], [0], [0], [1], [0, 0, 1, 1], [], []>} : vector<2x32xf32>, vector<32x128xf32>, vector<2x128xf32> -> vector<2x128xf32>
    %89 = vector.extract_strided_slice %7 {offsets = [0, 3, 0], sizes = [2, 1, 128], strides = [1, 1, 1]} : vector<2x8x128xf32> to vector<2x1x128xf32>
    %90 = vector.shape_cast %89 : vector<2x1x128xf32> to vector<2x128xf32>
    %91 = arith.addf %88, %90 : vector<2x128xf32>
    %92 = arith.negf %91 : vector<2x128xf32>
    %93 = math.exp %92 : vector<2x128xf32>
    %cst_31 = arith.constant 1.000000e+00 : f32
    %94 = vector.broadcast %cst_31 : f32 to vector<2x128xf32>
    %95 = arith.addf %94, %93 : vector<2x128xf32>
    %96 = arith.divf %94, %95 : vector<2x128xf32>
    %97 = math.tanh %91 : vector<2x128xf32>
    %98 = vector.extract_strided_slice %96 {offsets = [0, 0], sizes = [2, 32], strides = [1, 1]} : vector<2x128xf32> to vector<2x32xf32>
    %99 = vector.extract_strided_slice %96 {offsets = [0, 32], sizes = [2, 32], strides = [1, 1]} : vector<2x128xf32> to vector<2x32xf32>
    %100 = vector.extract_strided_slice %97 {offsets = [0, 64], sizes = [2, 32], strides = [1, 1]} : vector<2x128xf32> to vector<2x32xf32>
    %101 = vector.extract_strided_slice %96 {offsets = [0, 96], sizes = [2, 32], strides = [1, 1]} : vector<2x128xf32> to vector<2x32xf32>
    %102 = arith.mulf %99, %79 : vector<2x32xf32>
    %103 = arith.mulf %98, %100 : vector<2x32xf32>
    %104 = arith.addf %102, %103 : vector<2x32xf32>
    %105 = math.tanh %104 : vector<2x32xf32>
    %106 = arith.mulf %101, %105 : vector<2x32xf32>
    %cst_32 = arith.constant dense<0.000000e+00> : vector<2x128xf32>
    %107 = tpu.matmul %106, %9, %cst_32 {dimension_numbers = #tpu.dot_dimension_numbers<[1], [0], [0], [1], [0, 0, 1, 1], [], []>} : vector<2x32xf32>, vector<32x128xf32>, vector<2x128xf32> -> vector<2x128xf32>
    %108 = vector.broadcast %10 : vector<1x128xf32> to vector<2x128xf32>
    %109 = arith.addf %107, %108 : vector<2x128xf32>
    %c0_33 = arith.constant 0 : index
    %c3 = arith.constant 3 : index
    %c0_34 = arith.constant 0 : index
    %110 = vector.load %arg7[%c0_33, %c3, %c0_34] : memref<2x8x128xf32, #tpu.memory_space<vmem>>, vector<2x1x128xf32>
    %111 = vector.shape_cast %110 : vector<2x1x128xf32> to vector<2x128xf32>
    %112 = vector.shape_cast %109 : vector<2x128xf32> to vector<2x1x128xf32>
    tpu.vector_store %arg7[%c0_33, %c3, %c0_34], %112 {strides = array<i32>} : memref<2x8x128xf32, #tpu.memory_space<vmem>>, vector<2x1x128xf32>,
    %cst_35 = arith.constant dense<0.000000e+00> : vector<2x128xf32>
    %113 = tpu.matmul %106, %8, %cst_35 {dimension_numbers = #tpu.dot_dimension_numbers<[1], [0], [0], [1], [0, 0, 1, 1], [], []>} : vector<2x32xf32>, vector<32x128xf32>, vector<2x128xf32> -> vector<2x128xf32>
    %114 = vector.extract_strided_slice %7 {offsets = [0, 4, 0], sizes = [2, 1, 128], strides = [1, 1, 1]} : vector<2x8x128xf32> to vector<2x1x128xf32>
    %115 = vector.shape_cast %114 : vector<2x1x128xf32> to vector<2x128xf32>
    %116 = arith.addf %113, %115 : vector<2x128xf32>
    %117 = arith.negf %116 : vector<2x128xf32>
    %118 = math.exp %117 : vector<2x128xf32>
    %cst_36 = arith.constant 1.000000e+00 : f32
    %119 = vector.broadcast %cst_36 : f32 to vector<2x128xf32>
    %120 = arith.addf %119, %118 : vector<2x128xf32>
    %121 = arith.divf %119, %120 : vector<2x128xf32>
    %122 = math.tanh %116 : vector<2x128xf32>
    %123 = vector.extract_strided_slice %121 {offsets = [0, 0], sizes = [2, 32], strides = [1, 1]} : vector<2x128xf32> to vector<2x32xf32>
    %124 = vector.extract_strided_slice %121 {offsets = [0, 32], sizes = [2, 32], strides = [1, 1]} : vector<2x128xf32> to vector<2x32xf32>
    %125 = vector.extract_strided_slice %122 {offsets = [0, 64], sizes = [2, 32], strides = [1, 1]} : vector<2x128xf32> to vector<2x32xf32>
    %126 = vector.extract_strided_slice %121 {offsets = [0, 96], sizes = [2, 32], strides = [1, 1]} : vector<2x128xf32> to vector<2x32xf32>
    %127 = arith.mulf %124, %104 : vector<2x32xf32>
    %128 = arith.mulf %123, %125 : vector<2x32xf32>
    %129 = arith.addf %127, %128 : vector<2x32xf32>
    %130 = math.tanh %129 : vector<2x32xf32>
    %131 = arith.mulf %126, %130 : vector<2x32xf32>
    %cst_37 = arith.constant dense<0.000000e+00> : vector<2x128xf32>
    %132 = tpu.matmul %131, %9, %cst_37 {dimension_numbers = #tpu.dot_dimension_numbers<[1], [0], [0], [1], [0, 0, 1, 1], [], []>} : vector<2x32xf32>, vector<32x128xf32>, vector<2x128xf32> -> vector<2x128xf32>
    %133 = vector.broadcast %10 : vector<1x128xf32> to vector<2x128xf32>
    %134 = arith.addf %132, %133 : vector<2x128xf32>
    %c0_38 = arith.constant 0 : index
    %c4 = arith.constant 4 : index
    %c0_39 = arith.constant 0 : index
    %135 = vector.load %arg7[%c0_38, %c4, %c0_39] : memref<2x8x128xf32, #tpu.memory_space<vmem>>, vector<2x1x128xf32>
    %136 = vector.shape_cast %135 : vector<2x1x128xf32> to vector<2x128xf32>
    %137 = vector.shape_cast %134 : vector<2x128xf32> to vector<2x1x128xf32>
    tpu.vector_store %arg7[%c0_38, %c4, %c0_39], %137 {strides = array<i32>} : memref<2x8x128xf32, #tpu.memory_space<vmem>>, vector<2x1x128xf32>,
    %cst_40 = arith.constant dense<0.000000e+00> : vector<2x128xf32>
    %138 = tpu.matmul %131, %8, %cst_40 {dimension_numbers = #tpu.dot_dimension_numbers<[1], [0], [0], [1], [0, 0, 1, 1], [], []>} : vector<2x32xf32>, vector<32x128xf32>, vector<2x128xf32> -> vector<2x128xf32>
    %139 = vector.extract_strided_slice %7 {offsets = [0, 5, 0], sizes = [2, 1, 128], strides = [1, 1, 1]} : vector<2x8x128xf32> to vector<2x1x128xf32>
    %140 = vector.shape_cast %139 : vector<2x1x128xf32> to vector<2x128xf32>
    %141 = arith.addf %138, %140 : vector<2x128xf32>
    %142 = arith.negf %141 : vector<2x128xf32>
    %143 = math.exp %142 : vector<2x128xf32>
    %cst_41 = arith.constant 1.000000e+00 : f32
    %144 = vector.broadcast %cst_41 : f32 to vector<2x128xf32>
    %145 = arith.addf %144, %143 : vector<2x128xf32>
    %146 = arith.divf %144, %145 : vector<2x128xf32>
    %147 = math.tanh %141 : vector<2x128xf32>
    %148 = vector.extract_strided_slice %146 {offsets = [0, 0], sizes = [2, 32], strides = [1, 1]} : vector<2x128xf32> to vector<2x32xf32>
    %149 = vector.extract_strided_slice %146 {offsets = [0, 32], sizes = [2, 32], strides = [1, 1]} : vector<2x128xf32> to vector<2x32xf32>
    %150 = vector.extract_strided_slice %147 {offsets = [0, 64], sizes = [2, 32], strides = [1, 1]} : vector<2x128xf32> to vector<2x32xf32>
    %151 = vector.extract_strided_slice %146 {offsets = [0, 96], sizes = [2, 32], strides = [1, 1]} : vector<2x128xf32> to vector<2x32xf32>
    %152 = arith.mulf %149, %129 : vector<2x32xf32>
    %153 = arith.mulf %148, %150 : vector<2x32xf32>
    %154 = arith.addf %152, %153 : vector<2x32xf32>
    %155 = math.tanh %154 : vector<2x32xf32>
    %156 = arith.mulf %151, %155 : vector<2x32xf32>
    %cst_42 = arith.constant dense<0.000000e+00> : vector<2x128xf32>
    %157 = tpu.matmul %156, %9, %cst_42 {dimension_numbers = #tpu.dot_dimension_numbers<[1], [0], [0], [1], [0, 0, 1, 1], [], []>} : vector<2x32xf32>, vector<32x128xf32>, vector<2x128xf32> -> vector<2x128xf32>
    %158 = vector.broadcast %10 : vector<1x128xf32> to vector<2x128xf32>
    %159 = arith.addf %157, %158 : vector<2x128xf32>
    %c0_43 = arith.constant 0 : index
    %c5 = arith.constant 5 : index
    %c0_44 = arith.constant 0 : index
    %160 = vector.load %arg7[%c0_43, %c5, %c0_44] : memref<2x8x128xf32, #tpu.memory_space<vmem>>, vector<2x1x128xf32>
    %161 = vector.shape_cast %160 : vector<2x1x128xf32> to vector<2x128xf32>
    %162 = vector.shape_cast %159 : vector<2x128xf32> to vector<2x1x128xf32>
    tpu.vector_store %arg7[%c0_43, %c5, %c0_44], %162 {strides = array<i32>} : memref<2x8x128xf32, #tpu.memory_space<vmem>>, vector<2x1x128xf32>,
    %cst_45 = arith.constant dense<0.000000e+00> : vector<2x128xf32>
    %163 = tpu.matmul %156, %8, %cst_45 {dimension_numbers = #tpu.dot_dimension_numbers<[1], [0], [0], [1], [0, 0, 1, 1], [], []>} : vector<2x32xf32>, vector<32x128xf32>, vector<2x128xf32> -> vector<2x128xf32>
    %164 = vector.extract_strided_slice %7 {offsets = [0, 6, 0], sizes = [2, 1, 128], strides = [1, 1, 1]} : vector<2x8x128xf32> to vector<2x1x128xf32>
    %165 = vector.shape_cast %164 : vector<2x1x128xf32> to vector<2x128xf32>
    %166 = arith.addf %163, %165 : vector<2x128xf32>
    %167 = arith.negf %166 : vector<2x128xf32>
    %168 = math.exp %167 : vector<2x128xf32>
    %cst_46 = arith.constant 1.000000e+00 : f32
    %169 = vector.broadcast %cst_46 : f32 to vector<2x128xf32>
    %170 = arith.addf %169, %168 : vector<2x128xf32>
    %171 = arith.divf %169, %170 : vector<2x128xf32>
    %172 = math.tanh %166 : vector<2x128xf32>
    %173 = vector.extract_strided_slice %171 {offsets = [0, 0], sizes = [2, 32], strides = [1, 1]} : vector<2x128xf32> to vector<2x32xf32>
    %174 = vector.extract_strided_slice %171 {offsets = [0, 32], sizes = [2, 32], strides = [1, 1]} : vector<2x128xf32> to vector<2x32xf32>
    %175 = vector.extract_strided_slice %172 {offsets = [0, 64], sizes = [2, 32], strides = [1, 1]} : vector<2x128xf32> to vector<2x32xf32>
    %176 = vector.extract_strided_slice %171 {offsets = [0, 96], sizes = [2, 32], strides = [1, 1]} : vector<2x128xf32> to vector<2x32xf32>
    %177 = arith.mulf %174, %154 : vector<2x32xf32>
    %178 = arith.mulf %173, %175 : vector<2x32xf32>
    %179 = arith.addf %177, %178 : vector<2x32xf32>
    %180 = math.tanh %179 : vector<2x32xf32>
    %181 = arith.mulf %176, %180 : vector<2x32xf32>
    %cst_47 = arith.constant dense<0.000000e+00> : vector<2x128xf32>
    %182 = tpu.matmul %181, %9, %cst_47 {dimension_numbers = #tpu.dot_dimension_numbers<[1], [0], [0], [1], [0, 0, 1, 1], [], []>} : vector<2x32xf32>, vector<32x128xf32>, vector<2x128xf32> -> vector<2x128xf32>
    %183 = vector.broadcast %10 : vector<1x128xf32> to vector<2x128xf32>
    %184 = arith.addf %182, %183 : vector<2x128xf32>
    %c0_48 = arith.constant 0 : index
    %c6 = arith.constant 6 : index
    %c0_49 = arith.constant 0 : index
    %185 = vector.load %arg7[%c0_48, %c6, %c0_49] : memref<2x8x128xf32, #tpu.memory_space<vmem>>, vector<2x1x128xf32>
    %186 = vector.shape_cast %185 : vector<2x1x128xf32> to vector<2x128xf32>
    %187 = vector.shape_cast %184 : vector<2x128xf32> to vector<2x1x128xf32>
    tpu.vector_store %arg7[%c0_48, %c6, %c0_49], %187 {strides = array<i32>} : memref<2x8x128xf32, #tpu.memory_space<vmem>>, vector<2x1x128xf32>,
    %cst_50 = arith.constant dense<0.000000e+00> : vector<2x128xf32>
    %188 = tpu.matmul %181, %8, %cst_50 {dimension_numbers = #tpu.dot_dimension_numbers<[1], [0], [0], [1], [0, 0, 1, 1], [], []>} : vector<2x32xf32>, vector<32x128xf32>, vector<2x128xf32> -> vector<2x128xf32>
    %189 = vector.extract_strided_slice %7 {offsets = [0, 7, 0], sizes = [2, 1, 128], strides = [1, 1, 1]} : vector<2x8x128xf32> to vector<2x1x128xf32>
    %190 = vector.shape_cast %189 : vector<2x1x128xf32> to vector<2x128xf32>
    %191 = arith.addf %188, %190 : vector<2x128xf32>
    %192 = arith.negf %191 : vector<2x128xf32>
    %193 = math.exp %192 : vector<2x128xf32>
    %cst_51 = arith.constant 1.000000e+00 : f32
    %194 = vector.broadcast %cst_51 : f32 to vector<2x128xf32>
    %195 = arith.addf %194, %193 : vector<2x128xf32>
    %196 = arith.divf %194, %195 : vector<2x128xf32>
    %197 = math.tanh %191 : vector<2x128xf32>
    %198 = vector.extract_strided_slice %196 {offsets = [0, 0], sizes = [2, 32], strides = [1, 1]} : vector<2x128xf32> to vector<2x32xf32>
    %199 = vector.extract_strided_slice %196 {offsets = [0, 32], sizes = [2, 32], strides = [1, 1]} : vector<2x128xf32> to vector<2x32xf32>
    %200 = vector.extract_strided_slice %197 {offsets = [0, 64], sizes = [2, 32], strides = [1, 1]} : vector<2x128xf32> to vector<2x32xf32>
    %201 = vector.extract_strided_slice %196 {offsets = [0, 96], sizes = [2, 32], strides = [1, 1]} : vector<2x128xf32> to vector<2x32xf32>
    %202 = arith.mulf %199, %179 : vector<2x32xf32>
    %203 = arith.mulf %198, %200 : vector<2x32xf32>
    %204 = arith.addf %202, %203 : vector<2x32xf32>
    %205 = math.tanh %204 : vector<2x32xf32>
    %206 = arith.mulf %201, %205 : vector<2x32xf32>
    %cst_52 = arith.constant dense<0.000000e+00> : vector<2x128xf32>
    %207 = tpu.matmul %206, %9, %cst_52 {dimension_numbers = #tpu.dot_dimension_numbers<[1], [0], [0], [1], [0, 0, 1, 1], [], []>} : vector<2x32xf32>, vector<32x128xf32>, vector<2x128xf32> -> vector<2x128xf32>
    %208 = vector.broadcast %10 : vector<1x128xf32> to vector<2x128xf32>
    %209 = arith.addf %207, %208 : vector<2x128xf32>
    %c0_53 = arith.constant 0 : index
    %c7 = arith.constant 7 : index
    %c0_54 = arith.constant 0 : index
    %210 = vector.load %arg7[%c0_53, %c7, %c0_54] : memref<2x8x128xf32, #tpu.memory_space<vmem>>, vector<2x1x128xf32>
    %211 = vector.shape_cast %210 : vector<2x1x128xf32> to vector<2x128xf32>
    %212 = vector.shape_cast %209 : vector<2x128xf32> to vector<2x1x128xf32>
    tpu.vector_store %arg7[%c0_53, %c7, %c0_54], %212 {strides = array<i32>} : memref<2x8x128xf32, #tpu.memory_space<vmem>>, vector<2x1x128xf32>,
    return
  }
  func.func @transform_0(%arg0: i32) -> (i32, i32, i32) {
    %c0_i32 = arith.constant 0 : i32
    %c0_i32_0 = arith.constant 0 : i32
    %c0_i32_1 = arith.constant 0 : i32
    %c0_i32_2 = arith.constant 0 : i32
    return %c0_i32, %c0_i32_0, %c0_i32_1 : i32, i32, i32
  }
  func.func @transform_1(%arg0: i32) -> (i32, i32) {
    %c0_i32 = arith.constant 0 : i32
    %c0_i32_0 = arith.constant 0 : i32
    %c0_i32_1 = arith.constant 0 : i32
    return %c0_i32, %c0_i32_0 : i32, i32
  }
  func.func @transform_2(%arg0: i32) -> (i32, i32) {
    %c0_i32 = arith.constant 0 : i32
    %c0_i32_0 = arith.constant 0 : i32
    %c0_i32_1 = arith.constant 0 : i32
    return %c0_i32, %c0_i32_0 : i32, i32
  }
  func.func @transform_3(%arg0: i32) -> (i32, i32) {
    %c0_i32 = arith.constant 0 : i32
    %c0_i32_0 = arith.constant 0 : i32
    %c0_i32_1 = arith.constant 0 : i32
    return %c0_i32, %c0_i32_0 : i32, i32
  }
  func.func @transform_4(%arg0: i32) -> (i32, i32) {
    %c0_i32 = arith.constant 0 : i32
    %c0_i32_0 = arith.constant 0 : i32
    %c0_i32_1 = arith.constant 0 : i32
    return %c0_i32, %c0_i32_0 : i32, i32
  }
  func.func @transform_5(%arg0: i32) -> (i32, i32) {
    %c0_i32 = arith.constant 0 : i32
    %c0_i32_0 = arith.constant 0 : i32
    %c0_i32_1 = arith.constant 0 : i32
    return %c0_i32, %c0_i32_0 : i32, i32
  }
  func.func @transform_6(%arg0: i32) -> (i32, i32, i32) {
    %c0_i32 = arith.constant 0 : i32
    %c0_i32_0 = arith.constant 0 : i32
    %c0_i32_1 = arith.constant 0 : i32
    %c0_i32_2 = arith.constant 0 : i32
    return %c0_i32, %c0_i32_0, %c0_i32_1 : i32, i32, i32
  }
}

</mosaic_0001>

<bundles_post_ra>
// kernel: tpu_custom_call.1
= control target key start
LH: loop header
LB: loop body
LE: loop exit
PB: predicated region body
PF: predicated region fallthrough
CT: control target
= control target key end

     0   :  { %11 = vsyncpa [#allocation3], 0  ;;  %s2762_s0 = inlined_call_operand.hbm [shape: f32[2,8,16], index: 0, kind: input, shape index: {}]   ;;  %s2763_s1 = inlined_call_operand.hbm [shape: f32[16,128], index: 1, kind: input, shape index: {}]   ;;  %s2764_s2 = inlined_call_operand.hbm [shape: f32[32,128], index: 2, kind: input, shape index: {}]   ;;  %s2765_s3 = inlined_call_operand.vmem [shape: f32[1,128], index: 3, kind: input, shape index: {}]   ;;  %s2766_s4 = inlined_call_operand.hbm [shape: f32[32,128], index: 4, kind: input, shape index: {}]   ;;  %s2767_s5 = inlined_call_operand.vmem [shape: f32[1,128], index: 5, kind: input, shape index: {}]   ;;  %s2768_s6 = inlined_call_operand.hbm [shape: f32[2,8,128], index: 6, kind: output, shape index: {}]  }
   0x1   :  { %12 = vsyncpa [#allocation6], 0 }
   0x2   :  { %13 = vsyncpa [#allocation9], 0 }
   0x3   :  { %14 = vsyncpa [#allocation4], 0  ;;  %s2416_s21 = smov [#allocation5]   ;;  %s2417_s23 = smov [#allocation2]  }
   0x4   :  { %s32_s22 = sshll.u32 %s2416_s21, 4  ;;  %s20_s24 = sshll.u32 %s2417_s23, 4  ;;  %s33_s22 = int_to_ptr.vmem [resolvable:$true] %s32_s22  ;;  %s2464_s24 = int_to_ptr.vmem [resolvable:$true] %s20_s24 }
   0x5   :  { %s2298_s27 = scalar_lea.hbm %s2763_s1, 256 }
   0x6   :  { %p2299_p0 = scmp.ne.s32.totalorder %s2763_s1, %s2298_s27  ;;  %p2302_p1 = scmp.lt.u32.totalorder %s2298_s27, %s2763_s1 }
   0x8   :  { %p2304_p2 = pnand %p2302_p1, %p2299_p0 }
   0xa   :  { %2307 = shalt.err (!%p2304_p2)
}
   0xb   :  { %s2308_s8 = scalar_lea.vmem %s33_s22, 256  ;;  %p2313_p4 = scmp.lt.s32.totalorder %s33_s22, %s33_s22 }
   0xc   :  { %p2309_p3 = scmp.ne.s32.totalorder %s33_s22, %s2308_s8  ;;  %p2314_p5 = scmp.lt.s32.totalorder %s2308_s8, %s2308_s8 }
   0xe   :  { %p2315_p6 = por %p2314_p5, %p2313_p4 }
  0x10   :  { %p2316_p7 = pnand %p2315_p6, %p2309_p3 }
  0x12   :  { %2319 = shalt.err (!%p2316_p7)
}
  0x13   :  { %s2418_s9 = smov 128   ;;  %s2419_s10 = smov 8  }
  0x14   :  { %38 = dma.hbm_to_vmem [thread:$0]  %s2763_s1, 256, %s33_s22, [#allocation6], %s2418_s9, %s2418_s9, %s2419_s10  }
  0x15   :  { %s2320_s15 = scalar_lea.hbm %s2762_s0, 256 }
  0x16   :  { %p2321_p8 = scmp.ne.s32.totalorder %s2762_s0, %s2320_s15  ;;  %p2324_p9 = scmp.lt.u32.totalorder %s2320_s15, %s2762_s0 }
  0x18   :  { %p2326_p10 = pnand %p2324_p9, %p2321_p8 }
  0x1a   :  { %2329 = shalt.err (!%p2326_p10)
}
  0x1b   :  { %s2330_s20 = scalar_lea.vmem %s2464_s24, 256  ;;  %p2335_p12 = scmp.lt.s32.totalorder %s2464_s24, %s2464_s24 }
  0x1c   :  { %p2331_p11 = scmp.ne.s32.totalorder %s2464_s24, %s2330_s20  ;;  %p2336_p13 = scmp.lt.s32.totalorder %s2330_s20, %s2330_s20 }
  0x1e   :  { %p2337_p0 = por %p2336_p13, %p2335_p12 }
  0x20   :  { %p2338_p1 = pnand %p2337_p0, %p2331_p11 }
  0x22   :  { %2341 = shalt.err (!%p2338_p1)
}
  0x23   :  { %26 = dma.hbm_to_vmem [thread:$0]  %s2762_s0, 256, %s2464_s24, [#allocation3], %s2418_s9, %s2418_s9, %s2419_s10  }
  0x24   :  { %s2420_s22 = smov [#allocation7]   ;;  %s2421_s25 = smov [#allocation8]  }
  0x25   :  { %s44_s23 = sshll.u32 %s2420_s22, 4  ;;  %s58_s26 = sshll.u32 %s2421_s25, 4  ;;  %s45_s23 = int_to_ptr.vmem [resolvable:$true] %s44_s23  ;;  %s2501_s26 = int_to_ptr.vmem [resolvable:$true] %s58_s26 }
  0x26   :  { %s2342_s29 = scalar_lea.hbm %s2764_s2, 512 }
  0x27   :  { %p2343_p2 = scmp.ne.s32.totalorder %s2764_s2, %s2342_s29  ;;  %p2346_p3 = scmp.lt.u32.totalorder %s2342_s29, %s2764_s2 }
  0x29   :  { %p2348_p4 = pnand %p2346_p3, %p2343_p2 }
  0x2b   :  { %2351 = shalt.err (!%p2348_p4)
}
  0x2c   :  { %s2352_s0 = scalar_lea.vmem %s45_s23, 512  ;;  %p2357_p6 = scmp.lt.s32.totalorder %s45_s23, %s45_s23 }
  0x2d   :  { %p2353_p5 = scmp.ne.s32.totalorder %s45_s23, %s2352_s0  ;;  %p2358_p7 = scmp.lt.s32.totalorder %s2352_s0, %s2352_s0 }
  0x2f   :  { %p2359_p8 = por %p2358_p7, %p2357_p6 }
  0x31   :  { %p2360_p9 = pnand %p2359_p8, %p2353_p5 }
  0x33   :  { %2363 = shalt.err (!%p2360_p9)
}
  0x34   :  { %50 = dma.hbm_to_vmem [thread:$0]  %s2764_s2, 512, %s45_s23, [#allocation6], %s2418_s9, %s2418_s9, %s2419_s10  }
  0x35   :  { %s2364_s15 = scalar_lea.hbm %s2766_s4, 512 }
  0x36   :  { %p2365_p10 = scmp.ne.s32.totalorder %s2766_s4, %s2364_s15  ;;  %p2368_p11 = scmp.lt.u32.totalorder %s2364_s15, %s2766_s4 }
  0x38   :  { %p2370_p12 = pnand %p2368_p11, %p2365_p10 }
  0x3a   :  { %2373 = shalt.err (!%p2370_p12)
}
  0x3b   :  { %s2374_s20 = scalar_lea.vmem %s2501_s26, 512  ;;  %p2379_p0 = scmp.lt.s32.totalorder %s2501_s26, %s2501_s26 }
  0x3c   :  { %p2375_p13 = scmp.ne.s32.totalorder %s2501_s26, %s2374_s20  ;;  %p2380_p1 = scmp.lt.s32.totalorder %s2374_s20, %s2374_s20 }
  0x3e   :  { %p2381_p2 = por %p2380_p1, %p2379_p0 }
  0x40   :  { %p2382_p3 = pnand %p2381_p2, %p2375_p13 }
  0x42   :  { %2385 = shalt.err (!%p2382_p3)
}
  0x43   :  { %64 = dma.hbm_to_vmem [thread:$0]  %s2766_s4, 512, %s2501_s26, [#allocation9], %s2418_s9, %s2418_s9, %s2419_s10  }
  0x44   :  { %2408 = dma.done.wait [#allocation3], 256  }
  0x45   :  { %2409 = vsyncadd [#allocation3], 4294967040 }
  0x46   :  { %2410 = dma.done.wait [#allocation6], 768  }
  0x47   :  { %2411 = vsyncadd [#allocation6], 4294966528 }
  0x48   :  { %2412 = dma.done.wait [#allocation9], 512  }
  0x49   :  { %2413 = vsyncadd [#allocation9], 4294966784  ;;  %v2422_v0 = vmov 0.0|0.0   ;;  %vm2423_vm0 = vmmov 0   ;;  %v2424_v1 = vmov 0.0   ;;  %vm90_vm1 = vcmask 130048  }
  0x4a   :  { %2125 = vmatprep.subr.bf16.mxu1 %v2422_v0  ;;  %1953 = vmatprep.mubr.msk.f32.mxu1 %vm2423_vm0, %v2424_v1  ;;  %v81_v2 = vld [vmem:[#allocation5] sm:$0xff]  ;;  %v82_v3 = vld [vmem:[#allocation5 + $0x8] sm:$0xff]  ;;  %v172_v4 = vld [vmem:[#allocation7] sm:$0xff]  ;;  %vm184_vm2 = vcmask 1041409   ;;  %s2426_s22 = smov 32   ;;  %vm187_vm3 = vcmask 261120  }
  0x4b   :  { %v2121_v5 = vpack.c.bf16 %v82_v3, %v81_v2  ;;  %v173_v6 = vld [vmem:[#allocation7 + $0x8] sm:$0xff]  ;;  %v79_v7 = vld [vmem:[#allocation2] sm:$0xff]  ;;  %v174_v9 = vld [vmem:[#allocation7 + $0x10] sm:$0xff]  ;;  %v2427_v63 = vmov 1966171168   ;;  %v370_v3 = vlaneseq }
  0x4c   :  { %v2541_v8 = vpack.c.bf16 %v173_v6, %v172_v4  ;;  %1942 = vmatprep.mubr.msk.f32.mxu0 %vm90_vm1, %v79_v7  ;;  %v175_v10 = vld [vmem:[#allocation7 + $0x18] sm:$0xff]  ;;  %v80_v11 = vld [vmem:[#allocation2 + $0x8] sm:$0xff]  ;;  %v1811_v13 = vld [vmem:[%s2765_s3] ss:$0 sm:$0xff]  ;;  %s2425_s3 = smov 64   ;;  %v368_v2 = vunpack.c.l.s4 %v2427_v63 }
  0x4d   :  { %2122 = vmatprep.subr.bf16.mxu0 %v2121_v5  ;;  %v2545_v12 = vpack.c.bf16 %v175_v10, %v174_v9  ;;  %v176_v53 = vld [vmem:[#allocation8] sm:$0xff]  ;;  %v177_v54 = vld [vmem:[#allocation8 + $0x8] sm:$0xff]  ;;  %v178_v55 = vld [vmem:[#allocation8 + $0x10] sm:$0xff] }
  0x4e   :  { %2124 = vmatpush3.bf16.msra.mxu0 %v2121_v5  ;;  %2127 = vmatpush3.bf16.msra.mxu1 %v2541_v8  ;;  %v2588_v56 = vpack.c.bf16 %v177_v54, %v176_v53  ;;  %v179_v57 = vld [vmem:[#allocation8 + $0x18] sm:$0xff]  ;;  %v369_v4 = vunpack.c.0.s8 %v368_v2  ;;  %v371_v5 = vshrl.u32 %v370_v3, 7  ;;  %v2615_v6 = vld [vmem:[%s2767_s5] ss:$0 sm:$0xff]  ;;  %s2428_s5 = smov [#allocation10]  }
  0x4f   :  { %2128 = vmatprep.subr.bf16.mxu1 %v2422_v0  ;;  %2131 = vmatprep.subr.bf16.mxu0 %v2422_v0  ;;  %v2591_v58 = vpack.c.bf16 %v179_v57, %v178_v55  ;;  %s1797_s26 = sshll.u32 %s2428_s5, 4  ;;  %s1798_s26 = int_to_ptr.vmem [resolvable:$true] %s1797_s26 }
  0x50   :  { %v2617_v7 = vsub.s32 %v369_v4, %v371_v5  ;;  %s2386_s27 = scalar_lea.vmem %s1798_s26, 256  ;;  %p2391_p5 = scmp.lt.s32.totalorder %s1798_s26, %s1798_s26 }
  0x51   :  { %1943 = vmatmul.mubr.msk.f32.vlgmr.msra.gmra.mrb[0].mxu0 %vm90_vm1, %v80_v11  ;;  %p2387_p4 = scmp.ne.s32.totalorder %s1798_s26, %s2386_s27  ;;  %p2392_p6 = scmp.lt.s32.totalorder %s2386_s27, %s2386_s27 }
  0x52   :  { %2130 = vmatpush3.bf16.msra.mxu1 %v2545_v12  ;;  %1964 = vmatprep.mubr.msk.f32.mxu0 %vm2423_vm0, %v2424_v1 }
  0x53   :  { %2137 = vmatprep.subr.bf16.mxu1 %v2422_v0  ;;  %2133 = vmatpush3.bf16.msra.mxu0 %v2588_v56  ;;  %p2393_p7 = por %p2392_p6, %p2391_p5 }
  0x54   :  { %2134 = vmatprep.subr.bf16.mxu0 %v2422_v0 }
  0x55   :  { %1954 = vmatmul.mubr.f32.vlgmr.msra.gmra.mrb[0].mxu1 %v2424_v1  ;;  %p2394_p8 = pnand %p2393_p7, %p2387_p4 }
  0x56   :  { %2139 = vmatpush3.bf16.msra.mxu1 %v2541_v8  ;;  %1975 = vmatprep.mubr.msk.f32.mxu1 %vm2423_vm0, %v2424_v1 }
  0x57   :  { %2140 = vmatprep.subr.bf16.mxu1 %v2422_v0  ;;  %2136 = vmatpush3.bf16.msra.mxu0 %v2591_v58 }
  0x58   :  { %2143 = vmatprep.subr.bf16.mxu0 %v2422_v0 }
  0x5a   :  { %2142 = vmatpush3.bf16.msra.mxu1 %v2545_v12 }
  0x5b   :  { %2149 = vmatprep.subr.bf16.mxu1 %v2422_v0 }
 0x124   :  { %v1944_v14 = vpop.f32.mrb[0].mxu0 }
 0x125   :  { %v169_v15 = vadd.f32 %v1944_v14, %v1811_v13  ;;  %v163_v16 = vpop.f32.mrb[1].mxu0 }
 0x126   :  { %v164_v17 = vadd.f32 %v1811_v13, %v163_v16 }
 0x127   :  { %v183_v18 = vrot.slane %v169_v15, 7  ;;  %v593_v19 = vrot.slane %v169_v15, 1  ;;  %v793_v20 = vrot.slane %v169_v15, 2  ;;  %v993_v21 = vrot.slane %v169_v15, 3 }
 0x128   :  { %v257_v22 = vpop.f32.mrb[0].mxu1  ;;  %v393_v23 = vrot.slane %v164_v17, 1  ;;  %v592_v24 = vrot.slane %v164_v17, 2  ;;  %v792_v25 = vrot.slane %v164_v17, 3  ;;  %v992_v26 = vrot.slane %v164_v17, 4 }
 0x129   :  { %v185_v27 = vsel %vm184_vm2, %v183_v18, %v164_v17  ;;  %v1955_v28 = vpop.f32.mrb[1].mxu1  ;;  %v1192_v29 = vrot.slane %v164_v17, 5  ;;  %v1193_v30 = vrot.slane %v169_v15, 4  ;;  %v1392_v31 = vrot.slane %v164_v17, 6 }
 0x12a   :  { %v258_v32 = vadd.f32 %v257_v22, %v185_v27  ;;  %v2566_v33 = vsel %vm184_vm2, %v169_v15, %v393_v23  ;;  %v2569_v34 = vsel %vm184_vm2, %v593_v19, %v592_v24  ;;  %v2572_v35 = vsel %vm184_vm2, %v793_v20, %v792_v25 }
 0x12b   :  { %v2575_v36 = vsel %vm184_vm2, %v993_v21, %v992_v26  ;;  %v2578_v37 = vsel %vm184_vm2, %v1193_v30, %v1192_v29  ;;  %v1393_v38 = vrot.slane %v169_v15, 5  ;;  %v1592_v39 = vrot.slane %v164_v17, 7 }
 0x12c   :  { %2234 = vtanh.f32 %v258_v32  ;;  %v1593_v40 = vrot.slane %v169_v15, 6  ;;  %v1814_v44 = vmul.f32 -1.442695, %v258_v32 }
 0x12d   :  { %v2581_v41 = vsel %vm184_vm2, %v1393_v38, %v1392_v31 }
 0x12e   :  { %v2584_v42 = vsel %vm184_vm2, %v1593_v40, %v1592_v39  ;;  %2236 = vpow2.f32 %v1814_v44 }
 0x136   :  { %v2235_v43 = vpop.eup %2234 }
 0x137   :  { %270 = vrot.lane.b32.xlu0 %v2235_v43, %s2425_s3 }
 0x138   :  { %v2237_v45 = vpop.eup %2236 }
 0x139   :  { %v264_v46 = vadd.f32 1.0, %v2237_v45 }
 0x13b   :  { %2238 = vrcp.f32 %v264_v46 }
 0x145   :  { %v2239_v47 = vpop.eup %2238 }
 0x146   :  { %v268_v50 = vmul.f32 0.0, %v2239_v47 }
 0x1a9   :  { %v271_v48 = vpop.permute.xlu0 %270 }
 0x1aa   :  { %v273_v49 = vmul.f32 %v2239_v47, %v271_v48 }
 0x1ac   :  { %275 = vrot.lane.b32.xlu0 %v273_v49, %s2426_s22 }
 0x21e   :  { %v276_v51 = vpop.permute.xlu0 %275 }
 0x21f   :  { %v278_v52 = vadd.f32 %v276_v51, %v268_v50 }
 0x221   :  { %2240 = vtanh.f32 %v278_v52 }
 0x22b   :  { %v2241_v59 = vpop.eup %2240 }
 0x22c   :  { %281 = vrot.lane.b32.xlu1 %v2241_v59, %s2425_s3 }
 0x29e   :  { %v282_v60 = vpop.permute.xlu1 %281 }
 0x29f   :  { %v284_v61 = vmul.f32 %v2239_v47, %v282_v60 }
 0x2a1   :  { %292 = vrot.lane.b32.xlu1 %v284_v61, %s2426_s22 }
 0x313   :  { %v293_v62 = vpop.permute.xlu1 %292 }
 0x314   :  { %1965 = vmatmul.mubr.msk.f32.vlgmr.msra.gmra.mrb[2].mxu0 %vm187_vm3, %v293_v62  ;;  %1976 = vmatmul.mubr.msk.f32.vlgmr.msra.gmra.mrb[2].mxu1 %vm187_vm3, %v293_v62 }
 0x315   :  { %2145 = vmatpush3.bf16.msra.mxu0 %v2588_v56  ;;  %2151 = vmatpush3.bf16.msra.mxu1 %v2541_v8 }
 0x316   :  { %2146 = vmatprep.subr.bf16.mxu0 %v2422_v0  ;;  %2152 = vmatprep.subr.bf16.mxu1 %v2422_v0 }
 0x317   :  { %1997 = vmatprep.mubr.msk.f32.mxu1 %vm2423_vm0, %v2424_v1  ;;  %1986 = vmatprep.mubr.msk.f32.mxu0 %vm2423_vm0, %v2424_v1 }
 0x319   :  { %2148 = vmatpush3.bf16.msra.mxu0 %v2591_v58  ;;  %2154 = vmatpush3.bf16.msra.mxu1 %v2545_v12 }
 0x31a   :  { %2155 = vmatprep.subr.bf16.mxu0 %v2422_v0  ;;  %2161 = vmatprep.subr.bf16.mxu1 %v2422_v0 }
 0x3e7   :  { %v362_v9 = vpop.f32.mrb[2].mxu0  ;;  %v462_v10 = vpop.f32.mrb[2].mxu1 }
 0x3e8   :  { %v363_v11 = vadd.f32 %v2615_v6, %v362_v9  ;;  %v463_v13 = vadd.f32 %v462_v10, %v2566_v33  ;;  %v1966_v14 = vpop.f32.mrb[3].mxu0  ;;  %v1977_v15 = vpop.f32.mrb[3].mxu1 }
 0x3ea   :  { %v373_v16 = vrot.slane %v363_v11, %v2617_v7  ;;  %2242 = vtanh.f32 %v463_v13  ;;  %v1820_v19 = vmul.f32 -1.442695, %v463_v13 }
 0x3ec   :  { %v374_v17 = vcombine.high %v373_v16, %v373_v16  ;;  %1817 = vst.sshfl [vmem:[#allocation10] sm:$0x1 pattern:$0x73625140] %v373_v16  ;;  %2244 = vpow2.f32 %v1820_v19 }
 0x3ee   :  { %1818 = vst.sshfl [vmem:[#allocation10 + $0x8] sm:$0x1 pattern:$0x73625140] %v374_v17 }
 0x3f4   :  { %v2243_v18 = vpop.eup %2242 }
 0x3f5   :  { %475 = vrot.lane.b32.xlu0 %v2243_v18, %s2425_s3 }
 0x3f6   :  { %v2245_v20 = vpop.eup %2244 }
 0x3f7   :  { %v469_v21 = vadd.f32 1.0, %v2245_v20 }
 0x3f9   :  { %2246 = vrcp.f32 %v469_v21 }
 0x403   :  { %v2247_v22 = vpop.eup %2246 }
 0x404   :  { %v473_v25 = vmul.f32 %v2247_v22, %v278_v52 }
 0x467   :  { %v476_v23 = vpop.permute.xlu0 %475 }
 0x468   :  { %v478_v24 = vmul.f32 %v2247_v22, %v476_v23 }
 0x46a   :  { %480 = vrot.lane.b32.xlu1 %v478_v24, %s2426_s22 }
 0x4dc   :  { %v481_v26 = vpop.permute.xlu1 %480 }
 0x4dd   :  { %v483_v27 = vadd.f32 %v481_v26, %v473_v25 }
 0x4df   :  { %2248 = vtanh.f32 %v483_v27 }
 0x4e9   :  { %v2249_v28 = vpop.eup %2248 }
 0x4ea   :  { %486 = vrot.lane.b32.xlu0 %v2249_v28, %s2425_s3 }
 0x55c   :  { %v487_v29 = vpop.permute.xlu0 %486 }
 0x55d   :  { %v489_v30 = vmul.f32 %v2247_v22, %v487_v29 }
 0x55f   :  { %491 = vrot.lane.b32.xlu1 %v489_v30, %s2426_s22 }
 0x5d1   :  { %v492_v31 = vpop.permute.xlu1 %491 }
 0x5d2   :  { %1987 = vmatmul.mubr.msk.f32.vlgmr.msra.gmra.mrb[4].mxu0 %vm187_vm3, %v492_v31  ;;  %1998 = vmatmul.mubr.msk.f32.vlgmr.msra.gmra.mrb[4].mxu1 %vm187_vm3, %v492_v31 }
 0x5d3   :  { %2157 = vmatpush3.bf16.msra.mxu0 %v2588_v56  ;;  %2163 = vmatpush3.bf16.msra.mxu1 %v2541_v8 }
 0x5d4   :  { %2158 = vmatprep.subr.bf16.mxu0 %v2422_v0  ;;  %2164 = vmatprep.subr.bf16.mxu1 %v2422_v0 }
 0x5d5   :  { %2019 = vmatprep.mubr.msk.f32.mxu1 %vm2423_vm0, %v2424_v1  ;;  %2008 = vmatprep.mubr.msk.f32.mxu0 %vm2423_vm0, %v2424_v1 }
 0x5d7   :  { %2160 = vmatpush3.bf16.msra.mxu0 %v2591_v58  ;;  %2166 = vmatpush3.bf16.msra.mxu1 %v2545_v12 }
 0x5d8   :  { %2167 = vmatprep.subr.bf16.mxu0 %v2422_v0  ;;  %2173 = vmatprep.subr.bf16.mxu1 %v2422_v0 }
 0x6a5   :  { %v561_v32 = vpop.f32.mrb[4].mxu0  ;;  %v662_v33 = vpop.f32.mrb[4].mxu1 }
 0x6a6   :  { %v562_v38 = vadd.f32 %v2615_v6, %v561_v32  ;;  %v663_v39 = vadd.f32 %v662_v33, %v2569_v34  ;;  %v1988_v40 = vpop.f32.mrb[5].mxu0  ;;  %v1999_v43 = vpop.f32.mrb[5].mxu1 }
 0x6a8   :  { %v572_v44 = vrot.slane %v562_v38, %v2617_v7  ;;  %2250 = vtanh.f32 %v663_v39  ;;  %v1825_v47 = vmul.f32 -1.442695, %v663_v39 }
 0x6aa   :  { %v573_v45 = vcombine.high %v572_v44, %v572_v44  ;;  %1822 = vst.sshfl [vmem:[#allocation10 + $0x1] sm:$0x1 pattern:$0x73625140] %v572_v44  ;;  %2252 = vpow2.f32 %v1825_v47 }
 0x6ac   :  { %1823 = vst.sshfl [vmem:[#allocation10 + $0x9] sm:$0x1 pattern:$0x73625140] %v573_v45 }
 0x6b2   :  { %v2251_v46 = vpop.eup %2250 }
 0x6b3   :  { %675 = vrot.lane.b32.xlu0 %v2251_v46, %s2425_s3 }
 0x6b4   :  { %v2253_v48 = vpop.eup %2252 }
 0x6b5   :  { %v669_v49 = vadd.f32 1.0, %v2253_v48 }
 0x6b7   :  { %2254 = vrcp.f32 %v669_v49 }
 0x6c1   :  { %v2255_v50 = vpop.eup %2254 }
 0x6c2   :  { %v673_v34 = vmul.f32 %v2255_v50, %v483_v27 }
 0x725   :  { %v676_v51 = vpop.permute.xlu0 %675 }
 0x726   :  { %v678_v52 = vmul.f32 %v2255_v50, %v676_v51 }
 0x728   :  { %680 = vrot.lane.b32.xlu1 %v678_v52, %s2426_s22 }
 0x79a   :  { %v681_v53 = vpop.permute.xlu1 %680 }
 0x79b   :  { %v683_v54 = vadd.f32 %v681_v53, %v673_v34 }
 0x79d   :  { %2256 = vtanh.f32 %v683_v54 }
 0x7a7   :  { %v2257_v55 = vpop.eup %2256 }
 0x7a8   :  { %686 = vrot.lane.b32.xlu0 %v2257_v55, %s2425_s3 }
 0x81a   :  { %v687_v57 = vpop.permute.xlu0 %686 }
 0x81b   :  { %v689_v59 = vmul.f32 %v2255_v50, %v687_v57 }
 0x81d   :  { %691 = vrot.lane.b32.xlu1 %v689_v59, %s2426_s22 }
 0x88f   :  { %v692_v60 = vpop.permute.xlu1 %691 }
 0x890   :  { %2009 = vmatmul.mubr.msk.f32.vlgmr.msra.gmra.mrb[6].mxu0 %vm187_vm3, %v692_v60  ;;  %2020 = vmatmul.mubr.msk.f32.vlgmr.msra.gmra.mrb[6].mxu1 %vm187_vm3, %v692_v60 }
 0x891   :  { %2169 = vmatpush3.bf16.msra.mxu0 %v2588_v56  ;;  %2175 = vmatpush3.bf16.msra.mxu1 %v2541_v8 }
 0x892   :  { %2170 = vmatprep.subr.bf16.mxu0 %v2422_v0  ;;  %2176 = vmatprep.subr.bf16.mxu1 %v2422_v0 }
 0x893   :  { %2041 = vmatprep.mubr.msk.f32.mxu1 %vm2423_vm0, %v2424_v1  ;;  %2030 = vmatprep.mubr.msk.f32.mxu0 %vm2423_vm0, %v2424_v1 }
 0x895   :  { %2172 = vmatpush3.bf16.msra.mxu0 %v2591_v58  ;;  %2178 = vmatpush3.bf16.msra.mxu1 %v2545_v12 }
 0x896   :  { %2179 = vmatprep.subr.bf16.mxu0 %v2422_v0  ;;  %2185 = vmatprep.subr.bf16.mxu1 %v2422_v0 }
 0x963   :  { %v761_v61 = vpop.f32.mrb[6].mxu0  ;;  %v862_v62 = vpop.f32.mrb[6].mxu1 }
 0x964   :  { %v762_v63 = vadd.f32 %v2615_v6, %v761_v61  ;;  %v863_v2 = vadd.f32 %v862_v62, %v2572_v35  ;;  %v2010_v3 = vpop.f32.mrb[7].mxu0  ;;  %v2021_v4 = vpop.f32.mrb[7].mxu1 }
 0x966   :  { %v772_v5 = vrot.slane %v762_v63, %v2617_v7  ;;  %2258 = vtanh.f32 %v863_v2  ;;  %v1830_v11 = vmul.f32 -1.442695, %v863_v2 }
 0x968   :  { %v773_v9 = vcombine.high %v772_v5, %v772_v5  ;;  %1827 = vst.sshfl [vmem:[#allocation10 + $0x2] sm:$0x1 pattern:$0x73625140] %v772_v5  ;;  %2260 = vpow2.f32 %v1830_v11 }
 0x96a   :  { %1828 = vst.sshfl [vmem:[#allocation10 + $0xa] sm:$0x1 pattern:$0x73625140] %v773_v9 }
 0x970   :  { %v2259_v10 = vpop.eup %2258 }
 0x971   :  { %875 = vrot.lane.b32.xlu0 %v2259_v10, %s2425_s3 }
 0x972   :  { %v2261_v13 = vpop.eup %2260 }
 0x973   :  { %v869_v14 = vadd.f32 1.0, %v2261_v13 }
 0x975   :  { %2262 = vrcp.f32 %v869_v14 }
 0x97f   :  { %v2263_v15 = vpop.eup %2262 }
 0x980   :  { %v873_v35 = vmul.f32 %v2263_v15, %v683_v54 }
 0x9e3   :  { %v876_v16 = vpop.permute.xlu0 %875 }
 0x9e4   :  { %v878_v17 = vmul.f32 %v2263_v15, %v876_v16 }
 0x9e6   :  { %880 = vrot.lane.b32.xlu1 %v878_v17, %s2426_s22 }
 0xa58   :  { %v881_v18 = vpop.permute.xlu1 %880 }
 0xa59   :  { %v883_v19 = vadd.f32 %v881_v18, %v873_v35 }
 0xa5b   :  { %2264 = vtanh.f32 %v883_v19 }
 0xa65   :  { %v2265_v20 = vpop.eup %2264 }
 0xa66   :  { %886 = vrot.lane.b32.xlu0 %v2265_v20, %s2425_s3 }
 0xad8   :  { %v887_v21 = vpop.permute.xlu0 %886 }
 0xad9   :  { %v889_v22 = vmul.f32 %v2263_v15, %v887_v21 }
 0xadb   :  { %891 = vrot.lane.b32.xlu1 %v889_v22, %s2426_s22 }
 0xb4d   :  { %v892_v23 = vpop.permute.xlu1 %891 }
 0xb4e   :  { %2031 = vmatmul.mubr.msk.f32.vlgmr.msra.gmra.mrb[8].mxu0 %vm187_vm3, %v892_v23  ;;  %2042 = vmatmul.mubr.msk.f32.vlgmr.msra.gmra.mrb[8].mxu1 %vm187_vm3, %v892_v23 }
 0xb4f   :  { %2181 = vmatpush3.bf16.msra.mxu0 %v2588_v56  ;;  %2187 = vmatpush3.bf16.msra.mxu1 %v2541_v8 }
 0xb50   :  { %2182 = vmatprep.subr.bf16.mxu0 %v2422_v0  ;;  %2188 = vmatprep.subr.bf16.mxu1 %v2422_v0 }
 0xb51   :  { %2063 = vmatprep.mubr.msk.f32.mxu1 %vm2423_vm0, %v2424_v1  ;;  %2052 = vmatprep.mubr.msk.f32.mxu0 %vm2423_vm0, %v2424_v1 }
 0xb53   :  { %2184 = vmatpush3.bf16.msra.mxu0 %v2591_v58  ;;  %2190 = vmatpush3.bf16.msra.mxu1 %v2545_v12 }
 0xb54   :  { %2191 = vmatprep.subr.bf16.mxu0 %v2422_v0  ;;  %2197 = vmatprep.subr.bf16.mxu1 %v2422_v0 }
 0xc21   :  { %v961_v24 = vpop.f32.mrb[8].mxu0  ;;  %v1062_v25 = vpop.f32.mrb[8].mxu1 }
 0xc22   :  { %v962_v26 = vadd.f32 %v2615_v6, %v961_v24  ;;  %v1063_v27 = vadd.f32 %v1062_v25, %v2575_v36  ;;  %v2032_v28 = vpop.f32.mrb[9].mxu0  ;;  %v2043_v29 = vpop.f32.mrb[9].mxu1 }
 0xc24   :  { %v972_v30 = vrot.slane %v962_v26, %v2617_v7  ;;  %2266 = vtanh.f32 %v1063_v27  ;;  %v1835_v33 = vmul.f32 -1.442695, %v1063_v27 }
 0xc26   :  { %v973_v31 = vcombine.high %v972_v30, %v972_v30  ;;  %1832 = vst.sshfl [vmem:[#allocation10 + $0x3] sm:$0x1 pattern:$0x73625140] %v972_v30  ;;  %2268 = vpow2.f32 %v1835_v33 }
 0xc28   :  { %1833 = vst.sshfl [vmem:[#allocation10 + $0xb] sm:$0x1 pattern:$0x73625140] %v973_v31 }
 0xc2e   :  { %v2267_v32 = vpop.eup %2266 }
 0xc2f   :  { %1075 = vrot.lane.b32.xlu0 %v2267_v32, %s2425_s3 }
 0xc30   :  { %v2269_v38 = vpop.eup %2268 }
 0xc31   :  { %v1069_v39 = vadd.f32 1.0, %v2269_v38 }
 0xc33   :  { %2270 = vrcp.f32 %v1069_v39 }
 0xc3d   :  { %v2271_v40 = vpop.eup %2270 }
 0xc3e   :  { %v1073_v36 = vmul.f32 %v2271_v40, %v883_v19 }
 0xca1   :  { %v1076_v43 = vpop.permute.xlu0 %1075 }
 0xca2   :  { %v1078_v44 = vmul.f32 %v2271_v40, %v1076_v43 }
 0xca4   :  { %1080 = vrot.lane.b32.xlu1 %v1078_v44, %s2426_s22 }
 0xd16   :  { %v1081_v45 = vpop.permute.xlu1 %1080 }
 0xd17   :  { %v1083_v46 = vadd.f32 %v1081_v45, %v1073_v36 }
 0xd19   :  { %2272 = vtanh.f32 %v1083_v46 }
 0xd23   :  { %v2273_v47 = vpop.eup %2272 }
 0xd24   :  { %1086 = vrot.lane.b32.xlu0 %v2273_v47, %s2425_s3 }
 0xd96   :  { %v1087_v48 = vpop.permute.xlu0 %1086 }
 0xd97   :  { %v1089_v49 = vmul.f32 %v2271_v40, %v1087_v48 }
 0xd99   :  { %1091 = vrot.lane.b32.xlu1 %v1089_v49, %s2426_s22 }
 0xe0b   :  { %v1092_v50 = vpop.permute.xlu1 %1091 }
 0xe0c   :  { %2053 = vmatmul.mubr.msk.f32.vlgmr.msra.gmra.mrb[10].mxu0 %vm187_vm3, %v1092_v50  ;;  %2064 = vmatmul.mubr.msk.f32.vlgmr.msra.gmra.mrb[10].mxu1 %vm187_vm3, %v1092_v50 }
 0xe0d   :  { %2193 = vmatpush3.bf16.msra.mxu0 %v2588_v56  ;;  %2199 = vmatpush3.bf16.msra.mxu1 %v2541_v8 }
 0xe0e   :  { %2194 = vmatprep.subr.bf16.mxu0 %v2422_v0  ;;  %2200 = vmatprep.subr.bf16.mxu1 %v2422_v0 }
 0xe0f   :  { %2085 = vmatprep.mubr.msk.f32.mxu1 %vm2423_vm0, %v2424_v1  ;;  %2074 = vmatprep.mubr.msk.f32.mxu0 %vm2423_vm0, %v2424_v1 }
 0xe11   :  { %2196 = vmatpush3.bf16.msra.mxu0 %v2591_v58  ;;  %2202 = vmatpush3.bf16.msra.mxu1 %v2545_v12 }
 0xe12   :  { %2203 = vmatprep.subr.bf16.mxu0 %v2422_v0  ;;  %2209 = vmatprep.subr.bf16.mxu1 %v2422_v0 }
 0xedf   :  { %v1161_v51 = vpop.f32.mrb[10].mxu0  ;;  %v1262_v52 = vpop.f32.mrb[10].mxu1 }
 0xee0   :  { %v1162_v34 = vadd.f32 %v2615_v6, %v1161_v51  ;;  %v1263_v53 = vadd.f32 %v1262_v52, %v2578_v37  ;;  %v2054_v54 = vpop.f32.mrb[11].mxu0  ;;  %v2065_v55 = vpop.f32.mrb[11].mxu1 }
 0xee2   :  { %v1172_v57 = vrot.slane %v1162_v34, %v2617_v7  ;;  %2274 = vtanh.f32 %v1263_v53  ;;  %v1840_v61 = vmul.f32 -1.442695, %v1263_v53 }
 0xee4   :  { %v1173_v59 = vcombine.high %v1172_v57, %v1172_v57  ;;  %1837 = vst.sshfl [vmem:[#allocation10 + $0x4] sm:$0x1 pattern:$0x73625140] %v1172_v57  ;;  %2276 = vpow2.f32 %v1840_v61 }
 0xee6   :  { %1838 = vst.sshfl [vmem:[#allocation10 + $0xc] sm:$0x1 pattern:$0x73625140] %v1173_v59 }
 0xeec   :  { %v2275_v60 = vpop.eup %2274 }
 0xeed   :  { %1275 = vrot.lane.b32.xlu0 %v2275_v60, %s2425_s3 }
 0xeee   :  { %v2277_v62 = vpop.eup %2276 }
 0xeef   :  { %v1269_v63 = vadd.f32 1.0, %v2277_v62 }
 0xef1   :  { %2278 = vrcp.f32 %v1269_v63 }
 0xefb   :  { %v2279_v2 = vpop.eup %2278 }
 0xefc   :  { %v1273_v37 = vmul.f32 %v2279_v2, %v1083_v46 }
 0xf5f   :  { %v1276_v3 = vpop.permute.xlu0 %1275 }
 0xf60   :  { %v1278_v4 = vmul.f32 %v2279_v2, %v1276_v3 }
 0xf62   :  { %1280 = vrot.lane.b32.xlu1 %v1278_v4, %s2426_s22 }
 0xfd4   :  { %v1281_v5 = vpop.permute.xlu1 %1280 }
 0xfd5   :  { %v1283_v9 = vadd.f32 %v1281_v5, %v1273_v37 }
 0xfd7   :  { %2280 = vtanh.f32 %v1283_v9 }
 0xfe1   :  { %v2281_v10 = vpop.eup %2280 }
 0xfe2   :  { %1286 = vrot.lane.b32.xlu0 %v2281_v10, %s2425_s3 }
0x1054   :  { %v1287_v11 = vpop.permute.xlu0 %1286 }
0x1055   :  { %v1289_v13 = vmul.f32 %v2279_v2, %v1287_v11 }
0x1057   :  { %1291 = vrot.lane.b32.xlu1 %v1289_v13, %s2426_s22 }
0x10c9   :  { %v1292_v14 = vpop.permute.xlu1 %1291 }
0x10ca   :  { %2075 = vmatmul.mubr.msk.f32.vlgmr.msra.gmra.mrb[12].mxu0 %vm187_vm3, %v1292_v14  ;;  %2086 = vmatmul.mubr.msk.f32.vlgmr.msra.gmra.mrb[12].mxu1 %vm187_vm3, %v1292_v14 }
0x10cb   :  { %2205 = vmatpush3.bf16.msra.mxu0 %v2588_v56  ;;  %2211 = vmatpush3.bf16.msra.mxu1 %v2541_v8 }
0x10cc   :  { %2206 = vmatprep.subr.bf16.mxu0 %v2422_v0  ;;  %2212 = vmatprep.subr.bf16.mxu1 %v2422_v0 }
0x10cd   :  { %2107 = vmatprep.mubr.msk.f32.mxu1 %vm2423_vm0, %v2424_v1  ;;  %2096 = vmatprep.mubr.msk.f32.mxu0 %vm2423_vm0, %v2424_v1 }
0x10cf   :  { %2208 = vmatpush3.bf16.msra.mxu0 %v2591_v58  ;;  %2214 = vmatpush3.bf16.msra.mxu1 %v2545_v12 }
0x10d0   :  { %2215 = vmatprep.subr.bf16.mxu0 %v2422_v0 }
0x119d   :  { %v1361_v15 = vpop.f32.mrb[12].mxu0  ;;  %v1462_v16 = vpop.f32.mrb[12].mxu1 }
0x119e   :  { %v1362_v8 = vadd.f32 %v2615_v6, %v1361_v15  ;;  %v1463_v17 = vadd.f32 %v1462_v16, %v2581_v41  ;;  %v2076_v35 = vpop.f32.mrb[13].mxu0  ;;  %v2087_v18 = vpop.f32.mrb[13].mxu1 }
0x11a0   :  { %v1372_v19 = vrot.slane %v1362_v8, %v2617_v7  ;;  %2282 = vtanh.f32 %v1463_v17  ;;  %v1845_v12 = vmul.f32 -1.442695, %v1463_v17 }
0x11a2   :  { %v1373_v20 = vcombine.high %v1372_v19, %v1372_v19  ;;  %1842 = vst.sshfl [vmem:[#allocation10 + $0x5] sm:$0x1 pattern:$0x73625140] %v1372_v19  ;;  %2284 = vpow2.f32 %v1845_v12 }
0x11a4   :  { %1843 = vst.sshfl [vmem:[#allocation10 + $0xd] sm:$0x1 pattern:$0x73625140] %v1373_v20 }
0x11aa   :  { %v2283_v21 = vpop.eup %2282 }
0x11ab   :  { %1475 = vrot.lane.b32.xlu0 %v2283_v21, %s2425_s3 }
0x11ac   :  { %v2285_v22 = vpop.eup %2284 }
0x11ad   :  { %v1469_v23 = vadd.f32 1.0, %v2285_v22 }
0x11af   :  { %2286 = vrcp.f32 %v1469_v23 }
0x11b9   :  { %v2287_v24 = vpop.eup %2286 }
0x11ba   :  { %v1473_v41 = vmul.f32 %v2287_v24, %v1283_v9 }
0x121d   :  { %v1476_v25 = vpop.permute.xlu0 %1475 }
0x121e   :  { %v1478_v26 = vmul.f32 %v2287_v24, %v1476_v25 }
0x1220   :  { %1480 = vrot.lane.b32.xlu1 %v1478_v26, %s2426_s22 }
0x1292   :  { %v1481_v27 = vpop.permute.xlu1 %1480 }
0x1293   :  { %v1483_v28 = vadd.f32 %v1481_v27, %v1473_v41 }
0x1295   :  { %2288 = vtanh.f32 %v1483_v28 }
0x129f   :  { %v2289_v29 = vpop.eup %2288 }
0x12a0   :  { %1486 = vrot.lane.b32.xlu0 %v2289_v29, %s2425_s3 }
0x1312   :  { %v1487_v30 = vpop.permute.xlu0 %1486 }
0x1313   :  { %v1489_v31 = vmul.f32 %v2287_v24, %v1487_v30 }
0x1315   :  { %1491 = vrot.lane.b32.xlu1 %v1489_v31, %s2426_s22 }
0x1387   :  { %v1492_v32 = vpop.permute.xlu1 %1491 }
0x1388   :  { %2097 = vmatmul.mubr.msk.f32.vlgmr.msra.gmra.mrb[14].mxu0 %vm187_vm3, %v1492_v32  ;;  %2108 = vmatmul.mubr.msk.f32.vlgmr.msra.gmra.mrb[14].mxu1 %vm187_vm3, %v1492_v32 }
0x1389   :  { %2217 = vmatpush3.bf16.msra.mxu0 %v2588_v56  ;;  %2118 = vmatprep.mubr.msk.f32.mxu0 %vm2423_vm0, %v2424_v1 }
0x138a   :  { %2218 = vmatprep.subr.bf16.mxu0 %v2422_v0 }
0x138d   :  { %2220 = vmatpush3.bf16.msra.mxu0 %v2591_v58 }
0x145b   :  { %v1561_v33 = vpop.f32.mrb[14].mxu0  ;;  %v1662_v38 = vpop.f32.mrb[14].mxu1 }
0x145c   :  { %v1562_v39 = vadd.f32 %v2615_v6, %v1561_v33  ;;  %v1663_v40 = vadd.f32 %v1662_v38, %v2584_v42  ;;  %v2098_v43 = vpop.f32.mrb[15].mxu0  ;;  %v2109_v44 = vpop.f32.mrb[15].mxu1 }
0x145e   :  { %v1572_v36 = vrot.slane %v1562_v39, %v2617_v7  ;;  %2290 = vtanh.f32 %v1663_v40  ;;  %v1850_v0 = vmul.f32 -1.442695, %v1663_v40 }
0x1460   :  { %v1573_v45 = vcombine.high %v1572_v36, %v1572_v36  ;;  %1847 = vst.sshfl [vmem:[#allocation10 + $0x6] sm:$0x1 pattern:$0x73625140] %v1572_v36  ;;  %2292 = vpow2.f32 %v1850_v0 }
0x1462   :  { %1848 = vst.sshfl [vmem:[#allocation10 + $0xe] sm:$0x1 pattern:$0x73625140] %v1573_v45 }
0x1468   :  { %v2291_v56 = vpop.eup %2290 }
0x1469   :  { %1675 = vrot.lane.b32.xlu0 %v2291_v56, %s2425_s3 }
0x146a   :  { %v2293_v1 = vpop.eup %2292 }
0x146b   :  { %v1669_v58 = vadd.f32 1.0, %v2293_v1 }
0x146d   :  { %2294 = vrcp.f32 %v1669_v58 }
0x1477   :  { %v2295_v46 = vpop.eup %2294 }
0x1478   :  { %v1673_v42 = vmul.f32 %v2295_v46, %v1483_v28 }
0x14db   :  { %v1676_v47 = vpop.permute.xlu0 %1675 }
0x14dc   :  { %v1678_v48 = vmul.f32 %v2295_v46, %v1676_v47 }
0x14de   :  { %1680 = vrot.lane.b32.xlu1 %v1678_v48, %s2426_s22 }
0x1550   :  { %v1681_v49 = vpop.permute.xlu1 %1680 }
0x1551   :  { %v1683_v50 = vadd.f32 %v1681_v49, %v1673_v42 }
0x1553   :  { %2296 = vtanh.f32 %v1683_v50 }
0x155d   :  { %v2297_v51 = vpop.eup %2296 }
0x155e   :  { %1686 = vrot.lane.b32.xlu0 %v2297_v51, %s2425_s3 }
0x15d0   :  { %v1687_v52 = vpop.permute.xlu0 %1686 }
0x15d1   :  { %v1689_v34 = vmul.f32 %v2295_v46, %v1687_v52 }
0x15d3   :  { %1691 = vrot.lane.b32.xlu1 %v1689_v34, %s2426_s22 }
0x1645   :  { %v1692_v53 = vpop.permute.xlu1 %1691 }
0x1646   :  { %2119 = vmatmul.mubr.msk.f32.vlgmr.msra.gmra.mrb[16].mxu0 %vm187_vm3, %v1692_v53 }
0x1719   :  { %v1761_v54 = vpop.f32.mrb[16].mxu0 }
0x171a   :  { %v1762_v55 = vadd.f32 %v2615_v6, %v1761_v54  ;;  %v2120_v57 = vpop.f32.mrb[17].mxu0 }
0x171c   :  { %v1772_v59 = vrot.slane %v1762_v55, %v2617_v7 }
0x171e   :  { %v1773_v60 = vcombine.high %v1772_v59, %v1772_v59  ;;  %1852 = vst.sshfl [vmem:[#allocation10 + $0x7] sm:$0x1 pattern:$0x73625140] %v1772_v59 }
0x1720   :  { %1853 = vst.sshfl [vmem:[#allocation10 + $0xf] sm:$0x1 pattern:$0x73625140] %v1773_v60 }
0x1721   :  { %2397 = shalt.err (!%p2394_p8)
}
0x1722   :  { %s2398_s30 = scalar_lea.hbm %s2768_s6, 256 }
0x1723   :  { %p2399_p9 = scmp.ne.s32.totalorder %s2768_s6, %s2398_s30  ;;  %p2402_p10 = scmp.lt.u32.totalorder %s2398_s30, %s2768_s6 }
0x1725   :  { %p2404_p11 = pnand %p2402_p10, %p2399_p9 }
0x1727   :  { %2407 = shalt.err (!%p2404_p11)
}
0x1728   :  { %1803 = dma.vmem_to_hbm [thread:$0]  %s1798_s26, 256, %s2768_s6, [#allocation4], %s2418_s9, %s2418_s9, %s2419_s10  }
0x1729   :  { %2414 = dma.done.wait [#allocation4], 256  }
0x172a   :  { %2415 = vsyncadd [#allocation4], 4294967040 }
0x172b   :  { %1807 = vsyncpa [#allocation3], 1 }
0x172c   :  { %1808 = vsyncpa [#allocation6], 1 }
0x172d   :  { %1809 = vsyncpa [#allocation9], 1 }
0x172e   :  { %1810 = vsyncpa [#allocation4], 1 }

</bundles_post_ra>
